<compile_context>
chip_gen: v7x
topology: tpu7x:2x2x1
jax: 0.10.0
libtpu: 0.0.40
codegen_flags: <defaults>
</compile_context>

<pallas_src>
import math

import jax
import jax.numpy as jnp
from jax.experimental import pallas as pl
from jax.experimental.pallas import tpu as pltpu


def _round_up(x, m):
    return ((x + m - 1) // m) * m


def _pick_tf(f_pad, target):
    """Largest multiple of 128 that divides f_pad and is <= target."""
    target = max(128, min(target, f_pad))
    for cand in range(target // 128, 0, -1):
        t = cand * 128
        if f_pad % t == 0:
            return t
    return 128


def _default_tiles():
    """(tm, tf, vmem_limit_bytes) chosen from the detected per-core VMEM."""
    try:
        info = pltpu.get_tpu_info()
        vmem = getattr(info, "vmem_capacity_bytes", 64 << 20)
    except Exception:  # fall back to the most conservative (v7x) sizing
        vmem = 64 << 20
    if vmem >= (100 << 20):        # v5e / v6e: 128 MiB physical VMEM
        return 1024, 512, 100 << 20
    return 384, 512, 56 << 20      # v7x: 64 MiB per TC -- leave headroom


def ffn_kernel(x_ref, w1_ref, b1_ref, w2_ref, b2_ref, o_ref, acc_ref):
    # x_ref:(tm,Hp) w1_ref:(Hp,tf) b1_ref:(1,tf) w2_ref:(tf,Hp) b2_ref:(1,Hp)
    # o_ref:(tm,Hp) acc_ref:(tm,Hp) f32  -- f (grid axis 1) is the reduction.
    f = pl.program_id(1)

    @pl.when(f == 0)
    def _():
        acc_ref[...] = jnp.zeros_like(acc_ref)

    # First matmul for this filter slice; bias + ReLU epilogue in f32.
    # NOTE: h is a (tm, tf) f32 temporary (+ a bf16 copy) -- budget ~6*tm*tf B.
    h = jnp.dot(x_ref[...], w1_ref[...], preferred_element_type=jnp.float32)
    h = jnp.maximum(h + b1_ref[...].astype(jnp.float32), 0.0)
    # Dropout: identity in eval mode.
    # Second matmul: accumulate the partial (tm, Hp) product in f32.
    acc_ref[...] += jnp.dot(
        h.astype(w2_ref.dtype), w2_ref[...], preferred_element_type=jnp.float32
    )

    @pl.when(f == pl.num_programs(1) - 1)
    def _():
        o_ref[...] = (acc_ref[...] + b2_ref[...].astype(jnp.float32)).astype(o_ref.dtype)


def prepare_ffn_params(w1, b1, w2, b2, *, compute_dtype=jnp.bfloat16):
    """Pad weights to lane-dense multiples of 128 and cast to compute_dtype.

    Call ONCE at parameter-init time (NOT per forward): this hoists the full
    HBM read+write of the weight matrices out of the hot path.
    w1: (H, F); b1: (F,); w2: (F, H); b2: (H,) -- pre-transposed vs. PyTorch.
    """
    H, F = w1.shape
    assert w2.shape == (F, H) and b1.shape == (F,) and b2.shape == (H,)
    H_pad = _round_up(H, 128)
    F_pad = _round_up(F, 128)

    if (H_pad, F_pad) != (H, F):
        w1 = jnp.pad(w1, ((0, H_pad - H), (0, F_pad - F)))
        w2 = jnp.pad(w2, ((0, F_pad - F), (0, H_pad - H)))
        b1 = jnp.pad(b1, (0, F_pad - F))
        b2 = jnp.pad(b2, (0, H_pad - H))

    return {
        "w1": w1.astype(compute_dtype),
        "b1": b1.reshape(1, F_pad).astype(compute_dtype),
        "w2": w2.astype(compute_dtype),
        "b2": b2.reshape(1, H_pad).astype(compute_dtype),
        "H": H, "F": F, "H_pad": H_pad, "F_pad": F_pad,
        "compute_dtype": compute_dtype,
    }


def feed_forward_network(x, params, *, tm=None, tf=None, vmem_limit_bytes=None):
    """x: (B, S, H); params: dict from prepare_ffn_params. Returns (B, S, H)."""
    B, S, H = x.shape
    assert H == params["H"], "x hidden dim must match the prepared weights"
    H_pad, F_pad = params["H_pad"], params["F_pad"]
    M = B * S

    dtm, dtf, dvmem = _default_tiles()
    tm = dtm if tm is None else tm
    tf_target = dtf if tf is None else tf
    vmem_limit_bytes = dvmem if vmem_limit_bytes is None else vmem_limit_bytes

    # Clamp tiles for tiny inputs; keep everything lane/sublane aligned.
    tm = max(8, min(tm, _round_up(M, 8)))
    M_pad = _round_up(M, tm)
    tf = _pick_tf(F_pad, tf_target)

    # Per-call padding touches only x (weights were padded once at init).
    x_flat = x.reshape(M, H).astype(params["compute_dtype"])
    if (M_pad, H_pad) != (M, H):
        x_flat = jnp.pad(x_flat, ((0, M_pad - M), (0, H_pad - H)))

    out_flat = pl.pallas_call(
        ffn_kernel,
        out_shape=jax.ShapeDtypeStruct((M_pad, H_pad), x.dtype),
        grid=(M_pad // tm, F_pad // tf),
        in_specs=[
            pl.BlockSpec((tm, H_pad), lambda i, f: (i, 0)),   # x tile (f-invariant)
            pl.BlockSpec((H_pad, tf), lambda i, f: (0, f)),   # w1 slice (streamed)
            pl.BlockSpec((1, tf),     lambda i, f: (0, f)),   # b1 slice
            pl.BlockSpec((tf, H_pad), lambda i, f: (f, 0)),   # w2 slice (streamed)
            pl.BlockSpec((1, H_pad),  lambda i, f: (0, 0)),   # b2 (f-invariant)
        ],
        out_specs=pl.BlockSpec((tm, H_pad), lambda i, f: (i, 0)),
        scratch_shapes=[pltpu.VMEM((tm, H_pad), jnp.float32)],
        compiler_params=pltpu.CompilerParams(
            # token axis parallel (megacore / v7x 2-TC sharding), filter axis is
            # the reduction -> arbitrary; accumulator stays resident across it.
            dimension_semantics=("parallel", "arbitrary"),
            vmem_limit_bytes=vmem_limit_bytes,
        ),
    )(x_flat, params["w1"], params["b1"], params["w2"], params["b2"])

    return out_flat[:M, :H].astype(x.dtype).reshape(B, S, H)


def init_ffn_params(key, hidden_size, filter_size):
    """Xavier-uniform weights (matching nn.init.xavier_uniform_), zero biases."""
    k1, k2 = jax.random.split(key)
    bound1 = math.sqrt(6.0 / (hidden_size + filter_size))
    bound2 = math.sqrt(6.0 / (filter_size + hidden_size))
    # stored pre-transposed relative to torch's (out_features, in_features)
    w1 = jax.random.uniform(k1, (hidden_size, filter_size), jnp.float32,
                            minval=-bound1, maxval=bound1)
    w2 = jax.random.uniform(k2, (filter_size, hidden_size), jnp.float32,
                            minval=-bound2, maxval=bound2)
    b1 = jnp.zeros((filter_size,), jnp.float32)
    b2 = jnp.zeros((hidden_size,), jnp.float32)
    return w1, b1, w2, b2


if __name__ == "__main__":
    batch, seq, hidden_size, filter_size = 2, 8, 32, 64
    dropout_rate = 0.1  # unused in eval-mode forward

    key = jax.random.PRNGKey(0)
    kx, kp = jax.random.split(key)
    x = jax.random.normal(kx, (batch, seq, hidden_size), jnp.float32)
    w1, b1, w2, b2 = init_ffn_params(kp, hidden_size, filter_size)

    # One-time weight prep (pad + bf16 cast) -- off the per-forward hot path.
    params = prepare_ffn_params(w1, b1, w2, b2)

    out = feed_forward_network(x, params)
    out = jax.block_until_ready(out)

    # reference check in plain JAX (f32); kernel runs the bf16 MXU fast path
    # with f32 accumulation, so compare with mixed-precision tolerance.
    ref = jnp.maximum(x.reshape(-1, hidden_size) @ w1 + b1, 0.0) @ w2 + b2
    ref = ref.reshape(batch, seq, hidden_size)
    assert out.shape == (batch, seq, hidden_size)
    assert jnp.allclose(out, ref, atol=5e-2, rtol=5e-2), float(jnp.max(jnp.abs(out - ref)))

    print("KERNEL_OK")
</pallas_src>

<mosaic_0001>
module attributes {stable_mosaic.version = 11 : i64} {
  func.func @ffn_kernel(%arg0: i32, %arg1: i32, %arg2: memref<16x128xbf16, #tpu.memory_space<vmem>>, %arg3: memref<128x128xbf16, #tpu.memory_space<vmem>>, %arg4: memref<1x128xbf16, #tpu.memory_space<vmem>>, %arg5: memref<128x128xbf16, #tpu.memory_space<vmem>>, %arg6: memref<1x128xbf16, #tpu.memory_space<vmem>>, %arg7: memref<16x128xf32, #tpu.memory_space<vmem>>, %arg8: memref<16x128xf32, #tpu.memory_space<vmem>>) attributes {dimension_semantics = [#tpu.dimension_semantics<parallel>, #tpu.dimension_semantics<arbitrary>], iteration_bounds = array<i64: 1, 1>, scalar_prefetch = 0 : i64, scratch_operands = 1 : i64, tpu.core_type = #tpu.core_type<tc>, window_params = [{transform_indices = @transform_0, window_bounds = array<i64: 16, 128>}, {transform_indices = @transform_1, window_bounds = array<i64: 128, 128>}, {transform_indices = @transform_2, window_bounds = array<i64: 1, 128>}, {transform_indices = @transform_3, window_bounds = array<i64: 128, 128>}, {pipeline_mode = #tpu.pipeline_mode<synchronous>, transform_indices = @transform_4, window_bounds = array<i64: 1, 128>}, {transform_indices = @transform_5, window_bounds = array<i64: 16, 128>}]} {
    %c0_i32 = arith.constant 0 : i32
    %0 = arith.cmpi eq, %arg1, %c0_i32 : i32
    %1 = arith.extui %0 : i1 to i32
    %c0_i32_0 = arith.constant 0 : i32
    %2 = arith.cmpi ne, %1, %c0_i32_0 : i32
    scf.if %2 {
      %cst_16 = arith.constant 0.000000e+00 : f32
      %21 = vector.broadcast %cst_16 : f32 to vector<16x128xf32>
      %c0_17 = arith.constant 0 : index
      %c0_18 = arith.constant 0 : index
      %22 = vector.load %arg8[%c0_17, %c0_18] : memref<16x128xf32, #tpu.memory_space<vmem>>, vector<16x128xf32>
      tpu.vector_store %arg8[%c0_17, %c0_18], %21 {strides = array<i32>} : memref<16x128xf32, #tpu.memory_space<vmem>>, vector<16x128xf32>,
    } else {
    }
    %c0 = arith.constant 0 : index
    %c0_1 = arith.constant 0 : index
    %3 = vector.load %arg2[%c0, %c0_1] : memref<16x128xbf16, #tpu.memory_space<vmem>>, vector<16x128xbf16>
    %c0_2 = arith.constant 0 : index
    %c0_3 = arith.constant 0 : index
    %4 = vector.load %arg3[%c0_2, %c0_3] : memref<128x128xbf16, #tpu.memory_space<vmem>>, vector<128x128xbf16>
    %cst = arith.constant dense<0.000000e+00> : vector<16x128xf32>
    %5 = tpu.matmul %3, %4, %cst {dimension_numbers = #tpu.dot_dimension_numbers<[1], [0], [0], [1], [0, 0, 1, 1], [], []>} : vector<16x128xbf16>, vector<128x128xbf16>, vector<16x128xf32> -> vector<16x128xf32>
    %c0_4 = arith.constant 0 : index
    %c0_5 = arith.constant 0 : index
    %6 = vector.load %arg4[%c0_4, %c0_5] : memref<1x128xbf16, #tpu.memory_space<vmem>>, vector<1x128xbf16>
    %7 = arith.extf %6 : vector<1x128xbf16> to vector<1x128xf32>
    %8 = vector.broadcast %7 : vector<1x128xf32> to vector<16x128xf32>
    %9 = arith.addf %5, %8 : vector<16x128xf32>
    %cst_6 = arith.constant 0.000000e+00 : f32
    %10 = vector.broadcast %cst_6 : f32 to vector<16x128xf32>
    %11 = arith.maximumf %9, %10 : vector<16x128xf32>
    %c0_7 = arith.constant 0 : index
    %c0_8 = arith.constant 0 : index
    %12 = vector.load %arg8[%c0_7, %c0_8] : memref<16x128xf32, #tpu.memory_space<vmem>>, vector<16x128xf32>
    %13 = arith.truncf %11 : vector<16x128xf32> to vector<16x128xbf16>
    %c0_9 = arith.constant 0 : index
    %c0_10 = arith.constant 0 : index
    %14 = vector.load %arg5[%c0_9, %c0_10] : memref<128x128xbf16, #tpu.memory_space<vmem>>, vector<128x128xbf16>
    %cst_11 = arith.constant dense<0.000000e+00> : vector<16x128xf32>
    %15 = tpu.matmul %13, %14, %cst_11 {dimension_numbers = #tpu.dot_dimension_numbers<[1], [0], [0], [1], [0, 0, 1, 1], [], []>} : vector<16x128xbf16>, vector<128x128xbf16>, vector<16x128xf32> -> vector<16x128xf32>
    %16 = arith.addf %12, %15 : vector<16x128xf32>
    %c0_12 = arith.constant 0 : index
    %c0_13 = arith.constant 0 : index
    %17 = vector.load %arg8[%c0_12, %c0_13] : memref<16x128xf32, #tpu.memory_space<vmem>>, vector<16x128xf32>
    tpu.vector_store %arg8[%c0_12, %c0_13], %16 {strides = array<i32>} : memref<16x128xf32, #tpu.memory_space<vmem>>, vector<16x128xf32>,
    %c0_i32_14 = arith.constant 0 : i32
    %18 = arith.cmpi eq, %arg1, %c0_i32_14 : i32
    %19 = arith.extui %18 : i1 to i32
    %c0_i32_15 = arith.constant 0 : i32
    %20 = arith.cmpi ne, %19, %c0_i32_15 : i32
    scf.if %20 {
      %c0_16 = arith.constant 0 : index
      %c0_17 = arith.constant 0 : index
      %21 = vector.load %arg8[%c0_16, %c0_17] : memref<16x128xf32, #tpu.memory_space<vmem>>, vector<16x128xf32>
      %c0_18 = arith.constant 0 : index
      %c0_19 = arith.constant 0 : index
      %22 = vector.load %arg6[%c0_18, %c0_19] : memref<1x128xbf16, #tpu.memory_space<vmem>>, vector<1x128xbf16>
      %23 = arith.extf %22 : vector<1x128xbf16> to vector<1x128xf32>
      %24 = vector.broadcast %23 : vector<1x128xf32> to vector<16x128xf32>
      %25 = arith.addf %21, %24 : vector<16x128xf32>
      %c0_20 = arith.constant 0 : index
      %c0_21 = arith.constant 0 : index
      %26 = vector.load %arg7[%c0_20, %c0_21] : memref<16x128xf32, #tpu.memory_space<vmem>>, vector<16x128xf32>
      tpu.vector_store %arg7[%c0_20, %c0_21], %25 {strides = array<i32>} : memref<16x128xf32, #tpu.memory_space<vmem>>, vector<16x128xf32>,
    } else {
    }
    return
  }
  func.func @transform_0(%arg0: i32, %arg1: i32) -> (i32, i32) {
    %c0_i32 = arith.constant 0 : i32
    %c0_i32_0 = arith.constant 0 : i32
    return %arg0, %c0_i32 : i32, i32
  }
  func.func @transform_1(%arg0: i32, %arg1: i32) -> (i32, i32) {
    %c0_i32 = arith.constant 0 : i32
    %c0_i32_0 = arith.constant 0 : i32
    return %c0_i32, %arg1 : i32, i32
  }
  func.func @transform_2(%arg0: i32, %arg1: i32) -> (i32, i32) {
    %c0_i32 = arith.constant 0 : i32
    %c0_i32_0 = arith.constant 0 : i32
    return %c0_i32, %arg1 : i32, i32
  }
  func.func @transform_3(%arg0: i32, %arg1: i32) -> (i32, i32) {
    %c0_i32 = arith.constant 0 : i32
    %c0_i32_0 = arith.constant 0 : i32
    return %arg1, %c0_i32 : i32, i32
  }
  func.func @transform_4(%arg0: i32, %arg1: i32) -> (i32, i32) {
    %c0_i32 = arith.constant 0 : i32
    %c0_i32_0 = arith.constant 0 : i32
    %c0_i32_1 = arith.constant 0 : i32
    return %c0_i32, %c0_i32_0 : i32, i32
  }
  func.func @transform_5(%arg0: i32, %arg1: i32) -> (i32, i32) {
    %c0_i32 = arith.constant 0 : i32
    %c0_i32_0 = arith.constant 0 : i32
    return %arg0, %c0_i32 : i32, i32
  }
}

</mosaic_0001>

<bundles_post_ra>
// kernel: tpu_custom_call.1
= control target key start
LH: loop header
LB: loop body
LE: loop exit
PB: predicated region body
PF: predicated region fallthrough
CT: control target
= control target key end

     0   :  { %10 = vsyncpa [#allocation4], 0  ;;  %s641_s0 = inlined_call_operand.hbm [shape: bf16[16,128], index: 0, kind: input, shape index: {}]   ;;  %s642_s1 = inlined_call_operand.hbm [shape: bf16[128,128], index: 1, kind: input, shape index: {}]   ;;  %s643_s2 = inlined_call_operand.vmem [shape: bf16[1,128], index: 2, kind: input, shape index: {}]   ;;  %s644_s3 = inlined_call_operand.hbm [shape: bf16[128,128], index: 3, kind: input, shape index: {}]   ;;  %s645_s4 = inlined_call_operand.vmem [shape: bf16[1,128], index: 4, kind: input, shape index: {}]   ;;  %s646_s5 = inlined_call_operand.hbm [shape: f32[16,128], index: 5, kind: output, shape index: {}]  }
   0x1   :  { %11 = vsyncpa [#allocation7], 0 }
   0x2   :  { %12 = vsyncpa [#allocation5], 0  ;;  %s531_s18 = smov [#allocation6]   ;;  %s532_s20 = smov [#allocation3]  }
   0x3   :  { %s30_s19 = sshll.u32 %s531_s18, 4  ;;  %s18_s21 = sshll.u32 %s532_s20, 4  ;;  %s31_s19 = int_to_ptr.vmem [resolvable:$true] %s30_s19  ;;  %s571_s21 = int_to_ptr.vmem [resolvable:$true] %s18_s21 }
   0x4   :  { %s437_s24 = scalar_lea.hbm %s642_s1, 1024 }
   0x5   :  { %p438_p0 = scmp.ne.s32.totalorder %s642_s1, %s437_s24  ;;  %p441_p1 = scmp.lt.u32.totalorder %s437_s24, %s642_s1 }
   0x7   :  { %p443_p2 = pnand %p441_p1, %p438_p0 }
   0x9   :  { %446 = shalt.err (!%p443_p2)
}
   0xa   :  { %s447_s29 = scalar_lea.vmem %s31_s19, 1024  ;;  %p452_p4 = scmp.lt.s32.totalorder %s31_s19, %s31_s19 }
   0xb   :  { %p448_p3 = scmp.ne.s32.totalorder %s31_s19, %s447_s29  ;;  %p453_p5 = scmp.lt.s32.totalorder %s447_s29, %s447_s29 }
   0xd   :  { %p454_p6 = por %p453_p5, %p452_p4 }
   0xf   :  { %p455_p7 = pnand %p454_p6, %p448_p3 }
  0x11   :  { %458 = shalt.err (!%p455_p7)
}
  0x12   :  { %s533_s30 = smov 64   ;;  %s534_s6 = smov 4  }
  0x13   :  { %36 = dma.hbm_to_vmem [thread:$0]  %s642_s1, 1024, %s31_s19, [#allocation7], %s533_s30, %s533_s30, %s534_s6  }
  0x14   :  { %s459_s11 = scalar_lea.hbm %s641_s0, 128 }
  0x15   :  { %p460_p8 = scmp.ne.s32.totalorder %s641_s0, %s459_s11  ;;  %p463_p9 = scmp.lt.u32.totalorder %s459_s11, %s641_s0 }
  0x17   :  { %p465_p10 = pnand %p463_p9, %p460_p8 }
  0x19   :  { %468 = shalt.err (!%p465_p10)
}
  0x1a   :  { %s469_s16 = scalar_lea.vmem %s571_s21, 128  ;;  %p474_p12 = scmp.lt.s32.totalorder %s571_s21, %s571_s21 }
  0x1b   :  { %p470_p11 = scmp.ne.s32.totalorder %s571_s21, %s469_s16  ;;  %p475_p13 = scmp.lt.s32.totalorder %s469_s16, %s469_s16 }
  0x1d   :  { %p476_p0 = por %p475_p13, %p474_p12 }
  0x1f   :  { %p477_p1 = pnand %p476_p0, %p470_p11 }
  0x21   :  { %480 = shalt.err (!%p477_p1)
}
  0x22   :  { %24 = dma.hbm_to_vmem [thread:$0]  %s641_s0, 128, %s571_s21, [#allocation4], %s533_s30, %s533_s30, %s534_s6  }
  0x23   :  { %s535_s18 = smov [#allocation8]   ;;  %s481_s23 = scalar_lea.hbm %s644_s3, 1024 }
  0x24   :  { %s44_s19 = sshll.u32 %s535_s18, 4  ;;  %p482_p2 = scmp.ne.s32.totalorder %s644_s3, %s481_s23  ;;  %s45_s19 = int_to_ptr.vmem [resolvable:$true] %s44_s19 }
  0x25   :  { %p485_p3 = scmp.lt.u32.totalorder %s481_s23, %s644_s3 }
  0x27   :  { %p487_p4 = pnand %p485_p3, %p482_p2 }
  0x29   :  { %490 = shalt.err (!%p487_p4)
}
  0x2a   :  { %s491_s28 = scalar_lea.vmem %s45_s19, 1024  ;;  %p496_p6 = scmp.lt.s32.totalorder %s45_s19, %s45_s19 }
  0x2b   :  { %p492_p5 = scmp.ne.s32.totalorder %s45_s19, %s491_s28  ;;  %p497_p7 = scmp.lt.s32.totalorder %s491_s28, %s491_s28 }
  0x2d   :  { %p498_p8 = por %p497_p7, %p496_p6 }
  0x2f   :  { %p499_p9 = pnand %p498_p8, %p492_p5 }
  0x31   :  { %502 = shalt.err (!%p499_p9)
}
  0x32   :  { %50 = dma.hbm_to_vmem [thread:$0]  %s644_s3, 1024, %s45_s19, [#allocation7], %s533_s30, %s533_s30, %s534_s6  }
  0x33   :  { %525 = dma.done.wait [#allocation4], 128  }
  0x34   :  { %526 = vsyncadd [#allocation4], 4294967168 }
  0x35   :  { %527 = dma.done.wait [#allocation7], 2048  }
  0x36   :  { %528 = vsyncadd [#allocation7], 4294965248  ;;  %v536_v0 = vmov 0.0   ;;  %vm537_vm0 = vmmov 0   ;;  %v420_v1 = vld [vmem:[#allocation6] sm:$0xff]   ;;  %v421_v2 = vld [vmem:[#allocation6 + $0x8] sm:$0xff]   ;;  %v89_v18 = vlaneseq }
  0x37   :  { %370 = vmatprep.subr.bf16.mxu0 %v536_v0  ;;  %386 = vmatprep.mubr.msk.bf16.mxu0 %vm537_vm0, %v536_v0  ;;  %v422_v3 = vld [vmem:[#allocation6 + $0x10] sm:$0xff]   ;;  %v429_v4 = vld [vmem:[#allocation8] sm:$0xff]   ;;  %v423_v5 = vld [vmem:[#allocation6 + $0x18] sm:$0xff]  }
  0x38   :  { %390 = vmatprep.subr.bf16.mxu1 %v536_v0  ;;  %406 = vmatprep.mubr.msk.bf16.mxu1 %vm537_vm0, %v536_v0  ;;  %v430_v6 = vld [vmem:[#allocation8 + $0x8] sm:$0xff]   ;;  %v424_v7 = vld [vmem:[#allocation6 + $0x20] sm:$0xff]   ;;  %v431_v8 = vld [vmem:[#allocation8 + $0x10] sm:$0xff]   ;;  %v90_v19 = vshrl.u32 %v89_v18, 7 }
  0x39   :  { %371 = vmatpush3.bf16.msra.mxu0 %v420_v1  ;;  %391 = vmatpush3.bf16.msra.mxu1 %v429_v4  ;;  %v425_v9 = vld [vmem:[#allocation6 + $0x28] sm:$0xff]   ;;  %v432_v10 = vld [vmem:[#allocation8 + $0x18] sm:$0xff]   ;;  %v426_v11 = vld [vmem:[#allocation6 + $0x30] sm:$0xff]  }
  0x3a   :  { %372 = vmatprep.subr.bf16.mxu0 %v536_v0  ;;  %392 = vmatprep.subr.bf16.mxu1 %v536_v0  ;;  %v433_v12 = vld [vmem:[#allocation8 + $0x20] sm:$0xff]   ;;  %v427_v13 = vld [vmem:[#allocation6 + $0x38] sm:$0xff]   ;;  %v434_v14 = vld [vmem:[#allocation8 + $0x28] sm:$0xff]   ;;  %v91_v22 = vsub.s32 0, %v90_v19 }
  0x3b   :  { %v428_v15 = vld [vmem:[#allocation3] sm:$0xff]   ;;  %v435_v16 = vld [vmem:[#allocation8 + $0x30] sm:$0xff]  }
  0x3c   :  { %v436_v17 = vld [vmem:[#allocation8 + $0x38] sm:$0xff]  }
  0x3d   :  { %373 = vmatpush3.bf16.msra.mxu0 %v421_v2  ;;  %393 = vmatpush3.bf16.msra.mxu1 %v430_v6  ;;  %v87_v20 = vld [vmem:[%s643_s2] sm:$0x1]  ;;  %s538_s2 = smov [#allocation9]  }
  0x3e   :  { %374 = vmatprep.subr.bf16.mxu0 %v536_v0  ;;  %394 = vmatprep.subr.bf16.mxu1 %v536_v0  ;;  %v88_v21 = vunpack.c.l.bf16 %v87_v20  ;;  %v307_v33 = vld [vmem:[%s645_s4] sm:$0x1]  ;;  %s322_s7 = sshll.u32 %s538_s2, 4  ;;  %s323_s7 = int_to_ptr.vmem [resolvable:$true] %s322_s7 }
  0x3f   :  { %v308_v34 = vunpack.c.l.bf16 %v307_v33  ;;  %s503_s8 = scalar_lea.vmem %s323_s7, 256  ;;  %p508_p11 = scmp.lt.s32.totalorder %s323_s7, %s323_s7 }
  0x40   :  { %v92_v23 = vrot.slane %v88_v21, %v91_v22  ;;  %p504_p10 = scmp.ne.s32.totalorder %s323_s7, %s503_s8  ;;  %p509_p12 = scmp.lt.s32.totalorder %s503_s8, %s503_s8 }
  0x41   :  { %375 = vmatpush3.bf16.msra.mxu0 %v422_v3  ;;  %395 = vmatpush3.bf16.msra.mxu1 %v431_v8  ;;  %v312_v35 = vrot.slane %v308_v34, %v91_v22 }
  0x42   :  { %376 = vmatprep.subr.bf16.mxu0 %v536_v0  ;;  %396 = vmatprep.subr.bf16.mxu1 %v536_v0  ;;  %p510_p13 = por %p509_p12, %p508_p11 }
  0x44   :  { %p511_p0 = pnand %p510_p13, %p504_p10 }
  0x45   :  { %377 = vmatpush3.bf16.msra.mxu0 %v423_v5  ;;  %397 = vmatpush3.bf16.msra.mxu1 %v432_v10 }
  0x46   :  { %378 = vmatprep.subr.bf16.mxu0 %v536_v0  ;;  %398 = vmatprep.subr.bf16.mxu1 %v536_v0 }
  0x49   :  { %379 = vmatpush3.bf16.msra.mxu0 %v424_v7  ;;  %399 = vmatpush3.bf16.msra.mxu1 %v433_v12 }
  0x4a   :  { %380 = vmatprep.subr.bf16.mxu0 %v536_v0  ;;  %400 = vmatprep.subr.bf16.mxu1 %v536_v0 }
  0x4d   :  { %381 = vmatpush3.bf16.msra.mxu0 %v425_v9  ;;  %401 = vmatpush3.bf16.msra.mxu1 %v434_v14 }
  0x4e   :  { %382 = vmatprep.subr.bf16.mxu0 %v536_v0  ;;  %402 = vmatprep.subr.bf16.mxu1 %v536_v0 }
  0x51   :  { %383 = vmatpush3.bf16.msra.mxu0 %v426_v11  ;;  %403 = vmatpush3.bf16.msra.mxu1 %v435_v16 }
  0x52   :  { %384 = vmatprep.subr.bf16.mxu0 %v536_v0  ;;  %404 = vmatprep.subr.bf16.mxu1 %v536_v0 }
  0x55   :  { %385 = vmatpush3.bf16.msra.mxu0 %v427_v13  ;;  %405 = vmatpush3.bf16.msra.mxu1 %v436_v17 }
  0x58   :  { %387 = vmatmul.mubr.bf16.vlgmr.msra.gmra.mrb[0].mxu0 %v428_v15 }
 0x12b   :  { %v181_v24 = vpop.f32.mrb[0].mxu0 }
 0x12c   :  { %v182_v25 = vadd.f32 %v181_v24, %v92_v23  ;;  %v388_v26 = vpop.f32.mrb[1].mxu0 }
 0x12d   :  { %v184_v27 = vpop.f32.mrb[2].mxu0 }
 0x12e   :  { %v185_v28 = vadd.f32 %v184_v27, %v92_v23  ;;  %v389_v29 = vpop.f32.mrb[3].mxu0  ;;  %v188_v30 = vmax.f32 %v182_v25, 0.0 }
 0x130   :  { %v189_v31 = vmax.f32 %v185_v28, 0.0 }
 0x132   :  { %v192_v32 = vpack.c.bf16 %v189_v31, %v188_v30 }
 0x134   :  { %407 = vmatmul.mubr.bf16.vlgmr.msra.gmra.mrb[0].mxu1 %v192_v32 }
 0x207   :  { %v291_v36 = vpop.f32.mrb[0].mxu1 }
 0x208   :  { %v313_v37 = vadd.f32 %v312_v35, %v291_v36  ;;  %v408_v38 = vpop.f32.mrb[1].mxu1 }
 0x209   :  { %v294_v39 = vpop.f32.mrb[2].mxu1 }
 0x20a   :  { %315 = vst [vmem:[#allocation9] sm:$0xff] %v313_v37  ;;  %v314_v40 = vadd.f32 %v312_v35, %v294_v39  ;;  %v409_v41 = vpop.f32.mrb[3].mxu1 }
 0x20c   :  { %316 = vst [vmem:[#allocation9 + $0x8] sm:$0xff] %v314_v40 }
 0x20d   :  { %514 = shalt.err (!%p511_p0)
}
 0x20e   :  { %s515_s10 = scalar_lea.hbm %s646_s5, 256 }
 0x20f   :  { %p516_p1 = scmp.ne.s32.totalorder %s646_s5, %s515_s10  ;;  %p519_p2 = scmp.lt.u32.totalorder %s515_s10, %s646_s5 }
 0x211   :  { %p521_p3 = pnand %p519_p2, %p516_p1 }
 0x213   :  { %524 = shalt.err (!%p521_p3)
}
 0x214   :  { %s539_s15 = smov 128   ;;  %s540_s16 = smov 8  }
 0x215   :  { %328 = dma.vmem_to_hbm [thread:$0]  %s323_s7, 256, %s646_s5, [#allocation5], %s539_s15, %s539_s15, %s540_s16  }
 0x216   :  { %529 = dma.done.wait [#allocation5], 256  }
 0x217   :  { %530 = vsyncadd [#allocation5], 4294967040 }
 0x218   :  { %332 = vsyncpa [#allocation4], 1 }
 0x219   :  { %333 = vsyncpa [#allocation7], 1 }
 0x21a   :  { %334 = vsyncpa [#allocation5], 1 }

</bundles_post_ra>
